<compile_context>
chip_gen: v7x
topology: tpu7x:2x2x1
jax: 0.10.0
libtpu: 0.0.40
codegen_flags: <defaults>
</compile_context>

<pallas_src>
import numpy as np
import jax
import jax.numpy as jnp
from jax import lax
from jax.experimental import pallas as pl
from jax.experimental.pallas import tpu as pltpu

KSIZE = 7
PAD = 3


def _sigmoid(x):
    return 1.0 / (1.0 + jnp.exp(-x))


def cbam_kernel(x_ref, w1t_ref, w2t_ref, k_ref, o_ref):
    # x_ref : (Bt, C, HW) VMEM  -- Bt images, spatial dims flattened (lane-dense)
    # w1t   : (C, Ch)     VMEM  -- fc1 weight, pre-transposed
    # w2t   : (Ch, C)     VMEM  -- fc2 weight, pre-transposed
    # k_ref : (2, HW, HW) VMEM  -- dense 7x7-conv matrices for [avg, max] planes
    # o_ref : (Bt, C, HW) VMEM
    Bt, C, HW = x_ref.shape
    x = x_ref[...]

    # ---------------- Channel attention ----------------
    avg_p = jnp.sum(x, axis=2) * (1.0 / HW)          # (Bt, C)  single lane reduction
    max_p = jnp.max(x, axis=2)                       # (Bt, C)

    w1t = w1t_ref[...]                               # (C, Ch)
    w2t = w2t_ref[...]                               # (Ch, C)

    def shared_mlp(p):                               # (Bt, C) -> (Bt, C), on the MXU
        h = jnp.maximum(jnp.dot(p, w1t, preferred_element_type=jnp.float32), 0.0)
        return jnp.dot(h, w2t, preferred_element_type=jnp.float32)

    ca = _sigmoid(shared_mlp(avg_p) + shared_mlp(max_p))     # (Bt, C)
    out1 = x * ca[:, :, None]                                # (Bt, C, HW)

    # ---------------- Spatial attention ----------------
    avg_m = jnp.sum(out1, axis=1) * (1.0 / C)        # (Bt, HW)
    max_m = jnp.max(out1, axis=1)                    # (Bt, HW)

    # 7x7 same-padding conv == one dense matmul per plane (zero padding is baked
    # into the K matrices wrapper-side).  Runs on the otherwise-idle MXU.
    s = (jnp.dot(avg_m, k_ref[0], preferred_element_type=jnp.float32) +
         jnp.dot(max_m, k_ref[1], preferred_element_type=jnp.float32))   # (Bt, HW)
    sat = _sigmoid(s)

    o_ref[...] = out1 * sat[:, None, :]              # lane-dense, unmasked stores


def _conv_as_matrix(w_sa, H, W):
    """Fold the (1, 2, 7, 7) spatial-conv weights into dense (2, HW, HW) matrices
    with zero padding included.  Pure weight preprocessing, independent of x."""
    HW = H * W
    pos = np.arange(HW)
    py, px = np.divmod(pos, W)
    dy = py[:, None] - py[None, :]                   # input row - output row
    dx = px[:, None] - px[None, :]                   # input col - output col
    valid = (np.abs(dy) <= PAD) & (np.abs(dx) <= PAD)
    tap = np.where(valid, (dy + PAD) * KSIZE + (dx + PAD), 0)   # static tap indices
    valid_f = jnp.asarray(valid, jnp.float32)
    w_flat = w_sa.reshape(2, KSIZE * KSIZE)          # [avg_plane, max_plane] taps
    k_avg = w_flat[0][tap] * valid_f                 # (HW, HW)
    k_max = w_flat[1][tap] * valid_f                 # (HW, HW)
    return jnp.stack([k_avg, k_max], axis=0)         # (2, HW, HW)


def _pick_batch_tile(batch, per_image_bytes, target_bytes=1 << 20):
    """Largest divisor of `batch` whose block stays under ~1 MiB (VMEM-friendly
    on all of v5e/v6e/v7x while amortizing per-grid-step overhead)."""
    bt = int(max(1, min(batch, target_bytes // max(per_image_bytes, 1))))
    while batch % bt:
        bt -= 1
    return bt


def cbam_forward(x, w1, w2, w_sa):
    """x: (B,C,H,W) f32; w1: (Ch,C) fc1; w2: (C,Ch) fc2; w_sa: (1,2,7,7) conv."""
    B, C, H, W = x.shape
    Ch = w1.shape[0]
    HW = H * W

    x_flat = x.reshape(B, C, HW)                     # lane-dense view (free in XLA)
    w1t = jnp.transpose(w1)                          # (C, Ch)
    w2t = jnp.transpose(w2)                          # (Ch, C)
    k = _conv_as_matrix(w_sa, H, W)                  # (2, HW, HW)

    bt = _pick_batch_tile(B, C * HW * x.dtype.itemsize)

    out_flat = pl.pallas_call(
        cbam_kernel,
        out_shape=jax.ShapeDtypeStruct((B, C, HW), x.dtype),
        grid_spec=pltpu.PrefetchScalarGridSpec(
            num_scalar_prefetch=0,
            grid=(B // bt,),
            in_specs=[
                pl.BlockSpec((bt, C, HW), lambda b: (b, 0, 0)),
                pl.BlockSpec((C, Ch), lambda b: (0, 0)),
                pl.BlockSpec((Ch, C), lambda b: (0, 0)),
                pl.BlockSpec((2, HW, HW), lambda b: (0, 0, 0)),
            ],
            out_specs=pl.BlockSpec((bt, C, HW), lambda b: (b, 0, 0)),
        ),
        compiler_params=pltpu.CompilerParams(
            dimension_semantics=("parallel",),        # shard batch across v7x cores
            vmem_limit_bytes=32 * 1024 * 1024,        # headroom at larger shapes
        ),
    )(x_flat, w1t, w2t, k)
    return out_flat.reshape(B, C, H, W)


def cbam_reference(x, w1, w2, w_sa):
    """Pure-JAX reference reproducing the PyTorch CBAM forward."""
    hp = lax.Precision.HIGHEST
    avg_p = jnp.mean(x, axis=(2, 3))
    max_p = jnp.max(x, axis=(2, 3))

    def mlp(p):
        h = jnp.maximum(jnp.dot(p, w1.T, precision=hp), 0.0)
        return jnp.dot(h, w2.T, precision=hp)

    ca = jax.nn.sigmoid(mlp(avg_p) + mlp(max_p))
    out1 = x * ca[:, :, None, None]
    avg_m = jnp.mean(out1, axis=1, keepdims=True)
    max_m = jnp.max(out1, axis=1, keepdims=True)
    maps = jnp.concatenate([avg_m, max_m], axis=1)
    s = lax.conv_general_dilated(
        maps, w_sa, (1, 1), ((PAD, PAD), (PAD, PAD)),
        dimension_numbers=("NCHW", "OIHW", "NCHW"), precision=hp)
    return out1 * jax.nn.sigmoid(s)


if __name__ == "__main__":
    B, C, H, W = 2, 32, 16, 16
    ratio = 16
    Ch = C // ratio                                  # 2 (ratio=16, as in the module)

    key = jax.random.PRNGKey(0)
    kx, k1, k2, k3 = jax.random.split(key, 4)
    x = jax.random.normal(kx, (B, C, H, W), jnp.float32)
    w1 = jax.random.normal(k1, (Ch, C), jnp.float32) * 0.2        # fc1: Conv2d(C, C//r, 1)
    w2 = jax.random.normal(k2, (C, Ch), jnp.float32) * 0.2        # fc2: Conv2d(C//r, C, 1)
    w_sa = jax.random.normal(k3, (1, 2, KSIZE, KSIZE), jnp.float32) * 0.2  # Conv2d(2,1,7)

    out = jax.block_until_ready(cbam_forward(x, w1, w2, w_sa))
    ref = cbam_reference(x, w1, w2, w_sa)
    # Tolerance covers MXU f32 matmul-pass precision vs. the HIGHEST-precision
    # XLA reference (conv expressed as matmul in-kernel).
    np.testing.assert_allclose(np.asarray(out), np.asarray(ref), rtol=2e-3, atol=2e-3)
    print("KERNEL_OK")
</pallas_src>

<mosaic_0001>
module attributes {stable_mosaic.version = 11 : i64} {
  func.func @cbam_kernel(%arg0: i32, %arg1: memref<2x32x256xf32, #tpu.memory_space<vmem>>, %arg2: memref<32x2xf32, #tpu.memory_space<vmem>>, %arg3: memref<2x32xf32, #tpu.memory_space<vmem>>, %arg4: memref<2x256x256xf32, #tpu.memory_space<vmem>>, %arg5: memref<2x32x256xf32, #tpu.memory_space<vmem>>) attributes {dimension_semantics = [#tpu.dimension_semantics<parallel>], iteration_bounds = array<i64: 1>, scalar_prefetch = 0 : i64, scratch_operands = 0 : i64, tpu.core_type = #tpu.core_type<tc>, window_params = [{transform_indices = @transform_0, window_bounds = array<i64: 2, 32, 256>}, {pipeline_mode = #tpu.pipeline_mode<synchronous>, transform_indices = @transform_1, window_bounds = array<i64: 32, 2>}, {pipeline_mode = #tpu.pipeline_mode<synchronous>, transform_indices = @transform_2, window_bounds = array<i64: 2, 32>}, {pipeline_mode = #tpu.pipeline_mode<synchronous>, transform_indices = @transform_3, window_bounds = array<i64: 2, 256, 256>}, {transform_indices = @transform_4, window_bounds = array<i64: 2, 32, 256>}]} {
    %c0 = arith.constant 0 : index
    %c0_0 = arith.constant 0 : index
    %c0_1 = arith.constant 0 : index
    %0 = vector.load %arg1[%c0, %c0_0, %c0_1] : memref<2x32x256xf32, #tpu.memory_space<vmem>>, vector<2x32x256xf32>
    %cst = arith.constant dense<0.000000e+00> : vector<2x32xf32>
    %1 = vector.multi_reduction <add>, %0, %cst [2] : vector<2x32x256xf32> to vector<2x32xf32>
    %cst_2 = arith.constant 3.906250e-03 : f32
    %2 = vector.broadcast %cst_2 : f32 to vector<2x32xf32>
    %3 = arith.mulf %1, %2 : vector<2x32xf32>
    %cst_3 = arith.constant dense<0xFF800000> : vector<2x32xf32>
    %4 = vector.multi_reduction <maximumf>, %0, %cst_3 [2] : vector<2x32x256xf32> to vector<2x32xf32>
    %c0_4 = arith.constant 0 : index
    %c0_5 = arith.constant 0 : index
    %5 = vector.load %arg2[%c0_4, %c0_5] : memref<32x2xf32, #tpu.memory_space<vmem>>, vector<32x2xf32>
    %c0_6 = arith.constant 0 : index
    %c0_7 = arith.constant 0 : index
    %6 = vector.load %arg3[%c0_6, %c0_7] : memref<2x32xf32, #tpu.memory_space<vmem>>, vector<2x32xf32>
    %cst_8 = arith.constant dense<0.000000e+00> : vector<2x2xf32>
    %7 = tpu.matmul %3, %5, %cst_8 {dimension_numbers = #tpu.dot_dimension_numbers<[1], [0], [0], [1], [0, 0, 1, 1], [], []>} : vector<2x32xf32>, vector<32x2xf32>, vector<2x2xf32> -> vector<2x2xf32>
    %cst_9 = arith.constant 0.000000e+00 : f32
    %8 = vector.broadcast %cst_9 : f32 to vector<2x2xf32>
    %9 = arith.maximumf %7, %8 : vector<2x2xf32>
    %cst_10 = arith.constant dense<0.000000e+00> : vector<2x32xf32>
    %10 = tpu.matmul %9, %6, %cst_10 {dimension_numbers = #tpu.dot_dimension_numbers<[1], [0], [0], [1], [0, 0, 1, 1], [], []>} : vector<2x2xf32>, vector<2x32xf32>, vector<2x32xf32> -> vector<2x32xf32>
    %cst_11 = arith.constant dense<0.000000e+00> : vector<2x2xf32>
    %11 = tpu.matmul %4, %5, %cst_11 {dimension_numbers = #tpu.dot_dimension_numbers<[1], [0], [0], [1], [0, 0, 1, 1], [], []>} : vector<2x32xf32>, vector<32x2xf32>, vector<2x2xf32> -> vector<2x2xf32>
    %cst_12 = arith.constant 0.000000e+00 : f32
    %12 = vector.broadcast %cst_12 : f32 to vector<2x2xf32>
    %13 = arith.maximumf %11, %12 : vector<2x2xf32>
    %cst_13 = arith.constant dense<0.000000e+00> : vector<2x32xf32>
    %14 = tpu.matmul %13, %6, %cst_13 {dimension_numbers = #tpu.dot_dimension_numbers<[1], [0], [0], [1], [0, 0, 1, 1], [], []>} : vector<2x2xf32>, vector<2x32xf32>, vector<2x32xf32> -> vector<2x32xf32>
    %15 = arith.addf %10, %14 : vector<2x32xf32>
    %cst_14 = arith.constant 0.000000e+00 : f32
    %16 = vector.broadcast %cst_14 : f32 to vector<2x32xf32>
    %17 = arith.subf %16, %15 : vector<2x32xf32>
    %18 = math.exp %17 : vector<2x32xf32>
    %cst_15 = arith.constant 1.000000e+00 : f32
    %19 = vector.broadcast %cst_15 : f32 to vector<2x32xf32>
    %20 = arith.addf %19, %18 : vector<2x32xf32>
    %cst_16 = arith.constant 1.000000e+00 : f32
    %21 = vector.broadcast %cst_16 : f32 to vector<2x32xf32>
    %22 = arith.divf %21, %20 : vector<2x32xf32>
    %23 = vector.shape_cast %22 : vector<2x32xf32> to vector<2x32x1xf32>
    %24 = vector.broadcast %23 : vector<2x32x1xf32> to vector<2x32x256xf32>
    %25 = arith.mulf %0, %24 : vector<2x32x256xf32>
    %cst_17 = arith.constant dense<0.000000e+00> : vector<2x256xf32>
    %26 = vector.multi_reduction <add>, %25, %cst_17 [1] : vector<2x32x256xf32> to vector<2x256xf32>
    %cst_18 = arith.constant 3.125000e-02 : f32
    %27 = vector.broadcast %cst_18 : f32 to vector<2x256xf32>
    %28 = arith.mulf %26, %27 : vector<2x256xf32>
    %cst_19 = arith.constant dense<0xFF800000> : vector<2x256xf32>
    %29 = vector.multi_reduction <maximumf>, %25, %cst_19 [1] : vector<2x32x256xf32> to vector<2x256xf32>
    %c0_20 = arith.constant 0 : index
    %c0_21 = arith.constant 0 : index
    %c0_22 = arith.constant 0 : index
    %30 = vector.load %arg4[%c0_20, %c0_21, %c0_22] : memref<2x256x256xf32, #tpu.memory_space<vmem>>, vector<1x256x256xf32>
    %31 = vector.shape_cast %30 : vector<1x256x256xf32> to vector<256x256xf32>
    %cst_23 = arith.constant dense<0.000000e+00> : vector<2x256xf32>
    %32 = tpu.matmul %28, %31, %cst_23 {dimension_numbers = #tpu.dot_dimension_numbers<[1], [0], [0], [1], [0, 0, 1, 1], [], []>} : vector<2x256xf32>, vector<256x256xf32>, vector<2x256xf32> -> vector<2x256xf32>
    %c1 = arith.constant 1 : index
    %c0_24 = arith.constant 0 : index
    %c0_25 = arith.constant 0 : index
    %33 = vector.load %arg4[%c1, %c0_24, %c0_25] : memref<2x256x256xf32, #tpu.memory_space<vmem>>, vector<1x256x256xf32>
    %34 = vector.shape_cast %33 : vector<1x256x256xf32> to vector<256x256xf32>
    %cst_26 = arith.constant dense<0.000000e+00> : vector<2x256xf32>
    %35 = tpu.matmul %29, %34, %cst_26 {dimension_numbers = #tpu.dot_dimension_numbers<[1], [0], [0], [1], [0, 0, 1, 1], [], []>} : vector<2x256xf32>, vector<256x256xf32>, vector<2x256xf32> -> vector<2x256xf32>
    %36 = arith.addf %32, %35 : vector<2x256xf32>
    %cst_27 = arith.constant 0.000000e+00 : f32
    %37 = vector.broadcast %cst_27 : f32 to vector<2x256xf32>
    %38 = arith.subf %37, %36 : vector<2x256xf32>
    %39 = math.exp %38 : vector<2x256xf32>
    %cst_28 = arith.constant 1.000000e+00 : f32
    %40 = vector.broadcast %cst_28 : f32 to vector<2x256xf32>
    %41 = arith.addf %40, %39 : vector<2x256xf32>
    %cst_29 = arith.constant 1.000000e+00 : f32
    %42 = vector.broadcast %cst_29 : f32 to vector<2x256xf32>
    %43 = arith.divf %42, %41 : vector<2x256xf32>
    %44 = vector.shape_cast %43 : vector<2x256xf32> to vector<2x1x256xf32>
    %45 = vector.broadcast %44 : vector<2x1x256xf32> to vector<2x32x256xf32>
    %46 = arith.mulf %25, %45 : vector<2x32x256xf32>
    %c0_30 = arith.constant 0 : index
    %c0_31 = arith.constant 0 : index
    %c0_32 = arith.constant 0 : index
    %47 = vector.load %arg5[%c0_30, %c0_31, %c0_32] : memref<2x32x256xf32, #tpu.memory_space<vmem>>, vector<2x32x256xf32>
    tpu.vector_store %arg5[%c0_30, %c0_31, %c0_32], %46 {strides = array<i32>} : memref<2x32x256xf32, #tpu.memory_space<vmem>>, vector<2x32x256xf32>,
    return
  }
  func.func @transform_0(%arg0: i32) -> (i32, i32, i32) {
    %c0_i32 = arith.constant 0 : i32
    %c0_i32_0 = arith.constant 0 : i32
    %c0_i32_1 = arith.constant 0 : i32
    return %arg0, %c0_i32, %c0_i32_0 : i32, i32, i32
  }
  func.func @transform_1(%arg0: i32) -> (i32, i32) {
    %c0_i32 = arith.constant 0 : i32
    %c0_i32_0 = arith.constant 0 : i32
    %c0_i32_1 = arith.constant 0 : i32
    return %c0_i32, %c0_i32_0 : i32, i32
  }
  func.func @transform_2(%arg0: i32) -> (i32, i32) {
    %c0_i32 = arith.constant 0 : i32
    %c0_i32_0 = arith.constant 0 : i32
    %c0_i32_1 = arith.constant 0 : i32
    return %c0_i32, %c0_i32_0 : i32, i32
  }
  func.func @transform_3(%arg0: i32) -> (i32, i32, i32) {
    %c0_i32 = arith.constant 0 : i32
    %c0_i32_0 = arith.constant 0 : i32
    %c0_i32_1 = arith.constant 0 : i32
    %c0_i32_2 = arith.constant 0 : i32
    return %c0_i32, %c0_i32_0, %c0_i32_1 : i32, i32, i32
  }
  func.func @transform_4(%arg0: i32) -> (i32, i32, i32) {
    %c0_i32 = arith.constant 0 : i32
    %c0_i32_0 = arith.constant 0 : i32
    %c0_i32_1 = arith.constant 0 : i32
    return %arg0, %c0_i32, %c0_i32_0 : i32, i32, i32
  }
}

</mosaic_0001>

<bundles_post_ra>
// kernel: tpu_custom_call.1
= control target key start
LH: loop header
LB: loop body
LE: loop exit
PB: predicated region body
PF: predicated region fallthrough
CT: control target
= control target key end

     0   :  { %9 = vsyncpa [#allocation3], 0  ;;  %s1651_s0 = inlined_call_operand.hbm [shape: f32[2,32,256], index: 0, kind: input, shape index: {}]   ;;  %s1652_s1 = inlined_call_operand.vmem [shape: f32[32,2], index: 1, kind: input, shape index: {}]   ;;  %s1653_s2 = inlined_call_operand.vmem [shape: f32[2,32], index: 2, kind: input, shape index: {}]   ;;  %s1654_s3 = inlined_call_operand.hbm [shape: f32[2,256,256], index: 3, kind: input, shape index: {}]   ;;  %s1655_s4 = inlined_call_operand.hbm [shape: f32[2,32,256], index: 4, kind: output, shape index: {}]  }
   0x1   :  { %10 = vsyncpa [#allocation6], 0 }
   0x2   :  { %11 = vsyncpa [#allocation4], 0  ;;  %s1342_s15 = smov [#allocation2]   ;;  %s1270_s19 = scalar_lea.hbm %s1651_s0, 2048 }
   0x3   :  { %s17_s16 = sshll.u32 %s1342_s15, 4  ;;  %p1271_p0 = scmp.ne.s32.totalorder %s1651_s0, %s1270_s19  ;;  %s18_s16 = int_to_ptr.vmem [resolvable:$true] %s17_s16 }
   0x4   :  { %p1274_p1 = scmp.lt.u32.totalorder %s1270_s19, %s1651_s0 }
   0x6   :  { %p1276_p2 = pnand %p1274_p1, %p1271_p0 }
   0x8   :  { %1279 = shalt.err (!%p1276_p2)
}
   0x9   :  { %s1280_s24 = scalar_lea.vmem %s18_s16, 2048  ;;  %p1285_p4 = scmp.lt.s32.totalorder %s18_s16, %s18_s16 }
   0xa   :  { %p1281_p3 = scmp.ne.s32.totalorder %s18_s16, %s1280_s24  ;;  %p1286_p5 = scmp.lt.s32.totalorder %s1280_s24, %s1280_s24 }
   0xc   :  { %p1287_p6 = por %p1286_p5, %p1285_p4 }
   0xe   :  { %p1288_p7 = pnand %p1287_p6, %p1281_p3 }
  0x10   :  { %1291 = shalt.err (!%p1288_p7)
}
  0x11   :  { %s1343_s25 = smov 256   ;;  %s1344_s26 = smov 16  }
  0x12   :  { %23 = dma.hbm_to_vmem [thread:$0]  %s1651_s0, 2048, %s18_s16, [#allocation3], %s1343_s25, %s1343_s25, %s1344_s26  }
  0x13   :  { %s1345_s29 = smov [#allocation5]   ;;  %s1292_s7 = scalar_lea.hbm %s1654_s3, 16384 }
  0x14   :  { %s33_s30 = sshll.u32 %s1345_s29, 4  ;;  %p1293_p8 = scmp.ne.s32.totalorder %s1654_s3, %s1292_s7  ;;  %s34_s30 = int_to_ptr.vmem [resolvable:$true] %s33_s30 }
  0x15   :  { %p1296_p9 = scmp.lt.u32.totalorder %s1292_s7, %s1654_s3 }
  0x17   :  { %p1298_p10 = pnand %p1296_p9, %p1293_p8 }
  0x19   :  { %1301 = shalt.err (!%p1298_p10)
}
  0x1a   :  { %s1302_s12 = scalar_lea.vmem %s34_s30, 16384  ;;  %p1307_p12 = scmp.lt.s32.totalorder %s34_s30, %s34_s30 }
  0x1b   :  { %p1303_p11 = scmp.ne.s32.totalorder %s34_s30, %s1302_s12  ;;  %p1308_p13 = scmp.lt.s32.totalorder %s1302_s12, %s1302_s12 }
  0x1d   :  { %p1309_p0 = por %p1308_p13, %p1307_p12 }
  0x1f   :  { %p1310_p1 = pnand %p1309_p0, %p1303_p11 }
  0x21   :  { %1313 = shalt.err (!%p1310_p1)
}
  0x22   :  { %39 = dma.hbm_to_vmem [thread:$0]  %s1654_s3, 16384, %s34_s30, [#allocation6], %s1343_s25, %s1343_s25, %s1344_s26  }
  0x23   :  { %1336 = dma.done.wait [#allocation3], 2048  }
  0x24   :  { %1337 = vsyncadd [#allocation3], 4294965248 }
  0x25   :  { %1338 = dma.done.wait [#allocation6], 16384  }
  0x26   :  { %1339 = vsyncadd [#allocation6], 4294950912  ;;  %v1406_v0 = vld [vmem:[#allocation2 + $0x40] sm:$0xff]  ;;  %v1408_v1 = vld [vmem:[#allocation2 + $0x48] sm:$0xff]  ;;  %v1346_v35 = vmov 0.0|0.0   ;;  %vm1347_vm0 = vmmov 0   ;;  %v131_v40 = vlaneseq }
  0x27   :  { %v1410_v2 = vld [vmem:[#allocation2] sm:$0xff]  ;;  %v74_v3 = vadd.f32 %v1408_v1, %v1406_v0  ;;  %v1414_v4 = vld [vmem:[#allocation2 + $0x8] sm:$0xff]  ;;  %v1416_v5 = vld [vmem:[#allocation2 + $0x50] sm:$0xff]  ;;  %v106_v27 = vmax.f32 %v1406_v0, %v1408_v1  ;;  %1106 = vmatprep.subr.bf16.mxu0 %v1346_v35  ;;  %1112 = vmatprep.subr.bf16.mxu1 %v1346_v35  ;;  %v1348_v39 = vmov 0.0   ;;  %vm142_vm1 = vcmask 130112  }
  0x28   :  { %v1418_v6 = vld [vmem:[#allocation2 + $0x58] sm:$0xff]  ;;  %v62_v7 = vadd.f32 %v1414_v4, %v1410_v2  ;;  %v1422_v8 = vld [vmem:[#allocation2 + $0x10] sm:$0xff]  ;;  %v1430_v12 = vld [vmem:[#allocation2 + $0x60] sm:$0xff]  ;;  %v94_v25 = vmax.f32 %v1410_v2, %v1414_v4  ;;  %1082 = vmatprep.mubr.msk.f32.mxu0 %vm1347_vm0, %v1348_v39  ;;  %1093 = vmatprep.mubr.msk.f32.mxu1 %vm1347_vm0, %v1348_v39  ;;  %v132_v42 = vand.u32 127, %v131_v40  ;;  %v1488_v47 = vshrl.u32 %v131_v40, 7 }
  0x29   :  { %v1424_v9 = vld [vmem:[#allocation2 + $0x18] sm:$0xff]  ;;  %75 = vadd.xlane.f32.xlu1 %v74_v3  ;;  %v77_v10 = vadd.f32 %v1418_v6, %v1416_v5  ;;  %v1432_v13 = vld [vmem:[#allocation2 + $0x68] sm:$0xff]  ;;  %v1434_v14 = vld [vmem:[#allocation2 + $0x20] sm:$0xff]  ;;  %v109_v26 = vmax.f32 %v1416_v5, %v1418_v6  ;;  %vm149_vm2 = vcmask 195712   ;;  %vm156_vm3 = vcmask 261312  }
  0x2a   :  { %63 = vadd.xlane.f32.xlu0 %v62_v7  ;;  %v65_v11 = vadd.f32 %v1424_v9, %v1422_v8  ;;  %v1436_v15 = vld [vmem:[#allocation2 + $0x28] sm:$0xff]  ;;  %v80_v16 = vadd.f32 %v1432_v13, %v1430_v12  ;;  %v1442_v18 = vld [vmem:[#allocation2 + $0x70] sm:$0xff]  ;;  %v1444_v19 = vld [vmem:[#allocation2 + $0x78] sm:$0xff]  ;;  %v97_v24 = vmax.f32 %v1422_v8, %v1424_v9  ;;  %v112_v28 = vmax.f32 %v1430_v12, %v1432_v13 }
  0x2b   :  { %v68_v17 = vadd.f32 %v1436_v15, %v1434_v14  ;;  %v1446_v20 = vld [vmem:[#allocation2 + $0x30] sm:$0xff]  ;;  %v1448_v21 = vld [vmem:[#allocation2 + $0x38] sm:$0xff]  ;;  %v83_v22 = vadd.f32 %v1444_v19, %v1442_v18  ;;  %v100_v29 = vmax.f32 %v1434_v14, %v1436_v15  ;;  %v118_v30 = vld [vmem:[%s1652_s1] sm:$0xff]  ;;  %v115_v32 = vmax.f32 %v1442_v18, %v1444_v19 }
  0x2c   :  { %v71_v23 = vadd.f32 %v1448_v21, %v1446_v20  ;;  %v119_v31 = vld [vmem:[%s1652_s1 + $0x8] sm:$0xff]  ;;  %v103_v34 = vmax.f32 %v1446_v20, %v1448_v21  ;;  %v120_v36 = vld [vmem:[%s1652_s1 + $0x10] sm:$0xff]  ;;  %v121_v37 = vld [vmem:[%s1652_s1 + $0x18] sm:$0xff]  ;;  %v137_v44 = vadd.s32 4294967288, %v132_v42  ;;  %v144_v46 = vadd.s32 4294967280, %v132_v42 }
  0x2d   :  { %78 = vadd.xlane.f32.xlu1 %v77_v10  ;;  %v1107_v33 = vpack.c.bf16 %v119_v31, %v118_v30  ;;  %v1110_v38 = vpack.c.bf16 %v121_v37, %v120_v36  ;;  %v151_v51 = vadd.s32 4294967272, %v132_v42  ;;  %v135_v55 = vsub.s32 %v132_v42, %v1488_v47 }
  0x2e   :  { %66 = vadd.xlane.f32.xlu0 %v65_v11  ;;  %v140_v49 = vsub.s32 %v137_v44, %v1488_v47  ;;  %v147_v53 = vsub.s32 %v144_v46, %v1488_v47  ;;  %vm177_vm4 = vcmask 1041409   ;;  %vm179_vm5 = vcmask 261120  }
  0x2f   :  { %1108 = vmatpush3.bf16.msra.mxu0 %v1107_v33  ;;  %1114 = vmatpush3.bf16.msra.mxu1 %v1107_v33  ;;  %v154_v62 = vsub.s32 %v151_v51, %v1488_v47  ;;  %vm377_vm6 = vcmask 1041408   ;;  %vm373_vm7 = vcmask 15360  }
  0x30   :  { %1109 = vmatprep.subr.bf16.mxu0 %v1346_v35  ;;  %1115 = vmatprep.subr.bf16.mxu1 %v1346_v35 }
  0x31   :  { %81 = vadd.xlane.f32.xlu1 %v80_v16 }
  0x32   :  { %69 = vadd.xlane.f32.xlu0 %v68_v17 }
  0x33   :  { %1111 = vmatpush3.bf16.msra.mxu0 %v1110_v38  ;;  %1117 = vmatpush3.bf16.msra.mxu1 %v1110_v38 }
  0x34   :  { %1101 = vmatprep.subr.mxu0 %v1348_v39  ;;  %1096 = vmatprep.subr.mxu1 %v1348_v39 }
  0x35   :  { %84 = vadd.xlane.f32.xlu1 %v83_v22 }
  0x36   :  { %72 = vadd.xlane.f32.xlu0 %v71_v23 }
  0x39   :  { %98 = vmax.xlane.f32.xlu1 %v97_v24 }
  0x3a   :  { %95 = vmax.xlane.f32.xlu0 %v94_v25 }
  0x3d   :  { %110 = vmax.xlane.f32.xlu1 %v109_v26 }
  0x3e   :  { %107 = vmax.xlane.f32.xlu0 %v106_v27 }
  0x41   :  { %113 = vmax.xlane.f32.xlu1 %v112_v28 }
  0x42   :  { %101 = vmax.xlane.f32.xlu0 %v100_v29 }
  0x45   :  { %116 = vmax.xlane.f32.xlu1 %v115_v32 }
  0x46   :  { %104 = vmax.xlane.f32.xlu0 %v103_v34 }
  0xb6   :  { %v76_v41 = vpop.xlane.xlu1 %75 }
  0xb7   :  { %v64_v43 = vpop.xlane.xlu0 %63  ;;  %v90_v56 = vmul.f32 0.00390625, %v76_v41 }
  0xb8   :  { %v86_v59 = vmul.f32 0.00390625, %v64_v43 }
  0xb9   :  { %v161_v10 = vrot.slane %v90_v56, %v135_v55 }
  0xba   :  { %v79_v45 = vpop.xlane.xlu1 %78  ;;  %v136_v22 = vrot.slane %v86_v59, %v135_v55 }
  0xbb   :  { %v67_v48 = vpop.xlane.xlu0 %66  ;;  %v91_v50 = vmul.f32 0.00390625, %v79_v45 }
  0xbc   :  { %v87_v52 = vmul.f32 0.00390625, %v67_v48 }
  0xbd   :  { %v165_v61 = vrot.slane %v91_v50, %v140_v49 }
  0xbe   :  { %v82_v54 = vpop.xlane.xlu1 %81  ;;  %v141_v63 = vrot.slane %v87_v52, %v140_v49 }
  0xbf   :  { %v92_v57 = vmul.f32 0.00390625, %v82_v54  ;;  %v70_v58 = vpop.xlane.xlu0 %69  ;;  %v166_v24 = vsel %vm142_vm1, %v165_v61, %v161_v10  ;;  %v728_v10 = vld [vmem:[#allocation5 + $0x218] sm:$0xff] }
  0xc0   :  { %v88_v60 = vmul.f32 0.00390625, %v70_v58  ;;  %v143_v26 = vsel %vm142_vm1, %v141_v63, %v136_v22  ;;  %v663_v22 = vld [vmem:[#allocation5 + $0x18] sm:$0xff] }
  0xc1   :  { %v170_v3 = vrot.slane %v92_v57, %v147_v53 }
  0xc2   :  { %v85_v7 = vpop.xlane.xlu1 %84  ;;  %v148_v11 = vrot.slane %v88_v60, %v147_v53 }
  0xc3   :  { %v93_v16 = vmul.f32 0.00390625, %v85_v7  ;;  %v73_v17 = vpop.xlane.xlu0 %72  ;;  %v171_v27 = vsel %vm149_vm2, %v170_v3, %v166_v24  ;;  %v726_v7 = vld [vmem:[#allocation5 + $0x208] sm:$0xff] }
  0xc4   :  { %v89_v23 = vmul.f32 0.00390625, %v73_v17  ;;  %v150_v30 = vsel %vm149_vm2, %v148_v11, %v143_v26  ;;  %v725_v11 = vld [vmem:[#allocation5 + $0x200] sm:$0xff]  ;;  %v661_v17 = vld [vmem:[#allocation5 + $0x8] sm:$0xff]  ;;  %v662_v26 = vld [vmem:[#allocation5 + $0x10] sm:$0xff] }
  0xc5   :  { %v175_v25 = vrot.slane %v93_v16, %v154_v62  ;;  %v727_v16 = vld [vmem:[#allocation5 + $0x210] sm:$0xff]  ;;  %v1182_v24 = vpack.c.bf16 %v663_v22, %v661_v17  ;;  %v741_v22 = vld [vmem:[#allocation5 + $0x280] sm:$0xff] }
  0xc6   :  { %v155_v28 = vrot.slane %v89_v23, %v154_v62  ;;  %v99_v29 = vpop.xlane.xlu1 %98  ;;  %v1120_v23 = vpack.c.bf16 %v727_v16, %v725_v11  ;;  %v677_v11 = vld [vmem:[#allocation5 + $0x88] sm:$0xff] }
  0xc7   :  { %v96_v31 = vpop.xlane.xlu0 %95  ;;  %v176_v32 = vsel %vm156_vm3, %v175_v25, %v171_v27  ;;  %v268_v42 = vrot.slane %v99_v29, %v140_v49  ;;  %v660_v25 = vld [vmem:[#allocation5] sm:$0xff]  ;;  %v730_v27 = vld [vmem:[#allocation5 + $0x228] sm:$0xff]  ;;  %v732_v29 = vld [vmem:[#allocation5 + $0x238] sm:$0xff] }
  0xc8   :  { %v157_v33 = vsel %vm156_vm3, %v155_v28, %v150_v30  ;;  %v264_v43 = vrot.slane %v96_v31, %v135_v55  ;;  %v1184_v28 = vpack.c.bf16 %v662_v26, %v660_v25  ;;  %v729_v30 = vld [vmem:[#allocation5 + $0x220] sm:$0xff]  ;;  %v731_v31 = vld [vmem:[#allocation5 + $0x230] sm:$0xff] }
  0xc9   :  { %v178_v34 = vsel %vm177_vm4, %v176_v32, %v157_v33  ;;  %v1122_v32 = vpack.c.bf16 %v732_v29, %v730_v27  ;;  %v1124_v33 = vpack.c.bf16 %v731_v31, %v729_v30  ;;  %v678_v26 = vld [vmem:[#allocation5 + $0x90] sm:$0xff]  ;;  %v746_v27 = vld [vmem:[#allocation5 + $0x2a8] sm:$0xff]  ;;  %v683_v30 = vld [vmem:[#allocation5 + $0xb8] sm:$0xff] }
  0xca   :  { %1083 = vmatmul.mubr.msk.f32.vlgmr.msra.gmra.mrb[0].mxu0 %vm179_vm5, %v178_v34  ;;  %v111_v35 = vpop.xlane.xlu1 %110  ;;  %v269_v52 = vsel %vm142_vm1, %v268_v42, %v264_v43  ;;  %v665_v34 = vld [vmem:[#allocation5 + $0x28] sm:$0xff] }
  0xcb   :  { %v108_v36 = vpop.xlane.xlu0 %107  ;;  %1103 = vmatprep.mubr.msk.f32.mxu0 %vm1347_vm0, %v1348_v39  ;;  %v287_v38 = vrot.slane %v111_v35, %v140_v49  ;;  %v667_v35 = vld [vmem:[#allocation5 + $0x38] sm:$0xff]  ;;  %v681_v29 = vld [vmem:[#allocation5 + $0xa8] sm:$0xff] }
  0xcc   :  { %v283_v40 = vrot.slane %v108_v36, %v135_v55  ;;  %v664_v36 = vld [vmem:[#allocation5 + $0x20] sm:$0xff] }
  0xce   :  { %v114_v37 = vpop.xlane.xlu1 %113  ;;  %v288_v48 = vsel %vm142_vm1, %v287_v38, %v283_v40  ;;  %v666_v38 = vld [vmem:[#allocation5 + $0x30] sm:$0xff]  ;;  %v734_v40 = vld [vmem:[#allocation5 + $0x248] sm:$0xff] }
  0xcf   :  { %v102_v41 = vpop.xlane.xlu0 %101  ;;  %v292_v44 = vrot.slane %v114_v37, %v147_v53  ;;  %v1186_v37 = vpack.c.bf16 %v667_v35, %v665_v34  ;;  %v1188_v42 = vpack.c.bf16 %v666_v38, %v664_v36  ;;  %v745_v34 = vld [vmem:[#allocation5 + $0x2a0] sm:$0xff]  ;;  %v747_v35 = vld [vmem:[#allocation5 + $0x2b0] sm:$0xff] }
  0xd0   :  { %v273_v45 = vrot.slane %v102_v41, %v147_v53  ;;  %v122_v53 = vld [vmem:[%s1653_s2] sm:$0x3]  ;;  %v736_v41 = vld [vmem:[#allocation5 + $0x258] sm:$0xff]  ;;  %v682_v38 = vld [vmem:[#allocation5 + $0xb0] sm:$0xff]  ;;  %s1350_s2 = smov [#allocation7]  }
  0xd1   :  { %v293_v54 = vsel %vm149_vm2, %v292_v44, %v288_v48  ;;  %1102 = vmatpush3.msk.msra.mxu0 %vm377_vm6, %v122_v53  ;;  %v1126_v43 = vpack.c.bf16 %v736_v41, %v734_v40  ;;  %v733_v44 = vld [vmem:[#allocation5 + $0x240] sm:$0xff]  ;;  %v671_v48 = vld [vmem:[#allocation5 + $0x58] sm:$0xff]  ;;  %v750_v40 = vld [vmem:[#allocation5 + $0x2c8] sm:$0xff]  ;;  %s1041_s22 = sshll.u32 %s1350_s2, 4  ;;  %s1042_s22 = int_to_ptr.vmem [resolvable:$true] %s1041_s22 }
  0xd2   :  { %v117_v46 = vpop.xlane.xlu1 %116  ;;  %v274_v57 = vsel %vm149_vm2, %v273_v45, %v269_v52  ;;  %v735_v45 = vld [vmem:[#allocation5 + $0x250] sm:$0xff]  ;;  %v680_v36 = vld [vmem:[#allocation5 + $0xa0] sm:$0xff]  ;;  %v752_v41 = vld [vmem:[#allocation5 + $0x2d8] sm:$0xff]  ;;  %s1314_s23 = scalar_lea.vmem %s1042_s22, 2048  ;;  %p1319_p3 = scmp.lt.s32.totalorder %s1042_s22, %s1042_s22 }
  0xd3   :  { %v297_v50 = vrot.slane %v117_v46, %v154_v62  ;;  %v105_v51 = vpop.xlane.xlu0 %104  ;;  %v669_v46 = vld [vmem:[#allocation5 + $0x48] sm:$0xff]  ;;  %v1128_v52 = vpack.c.bf16 %v735_v45, %v733_v44  ;;  %v1140_v44 = vpack.c.bf16 %v747_v35, %v745_v34  ;;  %v1204_v45 = vpack.c.bf16 %v682_v38, %v680_v36  ;;  %v695_v34 = vld [vmem:[#allocation5 + $0x118] sm:$0xff]  ;;  %v692_v36 = vld [vmem:[#allocation5 + $0x100] sm:$0xff]  ;;  %p1315_p2 = scmp.ne.s32.totalorder %s1042_s22, %s1314_s23  ;;  %p1320_p4 = scmp.lt.s32.totalorder %s1314_s23, %s1314_s23 }
  0xd4   :  { %v278_v56 = vrot.slane %v105_v51, %v154_v62  ;;  %v670_v51 = vld [vmem:[#allocation5 + $0x50] sm:$0xff] }
  0xd5   :  { %v298_v58 = vsel %vm156_vm3, %v297_v50, %v293_v54  ;;  %v668_v50 = vld [vmem:[#allocation5 + $0x40] sm:$0xff]  ;;  %v1190_v54 = vpack.c.bf16 %v671_v48, %v669_v46  ;;  %v1142_v46 = vpack.c.bf16 %v752_v41, %v750_v40  ;;  %v762_v40 = vld [vmem:[#allocation5 + $0x328] sm:$0xff]  ;;  %v764_v41 = vld [vmem:[#allocation5 + $0x338] sm:$0xff]  ;;  %p1321_p5 = por %p1320_p4, %p1319_p3 }
  0xd6   :  { %v279_v59 = vsel %vm156_vm3, %v278_v56, %v274_v57  ;;  %v738_v56 = vld [vmem:[#allocation5 + $0x268] sm:$0xff]  ;;  %v740_v57 = vld [vmem:[#allocation5 + $0x278] sm:$0xff]  ;;  %v749_v48 = vld [vmem:[#allocation5 + $0x2c0] sm:$0xff] }
  0xd7   :  { %v299_v49 = vsel %vm177_vm4, %v298_v58, %v279_v59  ;;  %v737_v58 = vld [vmem:[#allocation5 + $0x260] sm:$0xff]  ;;  %v1192_v59 = vpack.c.bf16 %v670_v51, %v668_v50  ;;  %v751_v50 = vld [vmem:[#allocation5 + $0x2d0] sm:$0xff]  ;;  %p1322_p6 = pnand %p1321_p5, %p1315_p2 }
  0xd8   :  { %1094 = vmatmul.mubr.msk.f32.vlgmr.msra.gmra.mrb[0].mxu1 %vm179_vm5, %v299_v49  ;;  %v1130_v49 = vpack.c.bf16 %v740_v57, %v738_v56  ;;  %v684_v51 = vld [vmem:[#allocation5 + $0xc0] sm:$0xff]  ;;  %v754_v56 = vld [vmem:[#allocation5 + $0x2e8] sm:$0xff]  ;;  %v756_v57 = vld [vmem:[#allocation5 + $0x2f8] sm:$0xff] }
  0xd9   :  { %1098 = vmatprep.mubr.msk.f32.mxu1 %vm1347_vm0, %v1348_v39  ;;  %1097 = vmatpush3.msk.msra.mxu1 %vm377_vm6, %v122_v53  ;;  %v1118_v39 = vpack.c.bf16 %v728_v10, %v726_v7  ;;  %v739_v53 = vld [vmem:[#allocation5 + $0x270] sm:$0xff]  ;;  %v744_v7 = vld [vmem:[#allocation5 + $0x298] sm:$0xff] }
  0xda   :  { %1183 = vmatprep.subr.bf16.mxu1 %v1182_v24  ;;  %v1132_v10 = vpack.c.bf16 %v739_v53, %v737_v58  ;;  %v676_v24 = vld [vmem:[#allocation5 + $0x80] sm:$0xff]  ;;  %v1144_v58 = vpack.c.bf16 %v751_v50, %v749_v48  ;;  %v699_v48 = vld [vmem:[#allocation5 + $0x138] sm:$0xff]  ;;  %v1518_v50 = vsub.s32 0, %v1488_v47 }
  0xdb   :  { %1119 = vmatprep.subr.bf16.mxu0 %v1118_v39  ;;  %v679_v39 = vld [vmem:[#allocation5 + $0x98] sm:$0xff]  ;;  %v753_v53 = vld [vmem:[#allocation5 + $0x2e0] sm:$0xff] }
  0xdc   :  { %v1198_v25 = vpack.c.bf16 %v679_v39, %v677_v11 }
 0x19d   :  { %v248_v55 = vpop.f32.mrb[0].mxu0 }
 0x19e   :  { %v252_v60 = vmax.f32 %v248_v55, 0.0  ;;  %v1084_v61 = vpop.f32.mrb[1].mxu0  ;;  %v673_v55 = vld [vmem:[#allocation5 + $0x68] sm:$0xff] }
 0x1a0   :  { %1104 = vmatmul.mubr.msk.f32.vlgmr.msra.gmra.mrb[2].mxu0 %vm373_vm7, %v252_v60  ;;  %v675_v60 = vld [vmem:[#allocation5 + $0x78] sm:$0xff] }
 0x1a1   :  { %1121 = vmatpush1.bf16.msra.mxu0 %v1120_v23  ;;  %v1194_v61 = vpack.c.bf16 %v675_v60, %v673_v55  ;;  %v743_v23 = vld [vmem:[#allocation5 + $0x290] sm:$0xff] }
 0x1a2   :  { %1123 = vmatprep.subr.bf16.mxu0 %v1122_v32  ;;  %v1136_v31 = vpack.c.bf16 %v743_v23, %v741_v22  ;;  %v1200_v32 = vpack.c.bf16 %v678_v26, %v676_v24  ;;  %v755_v55 = vld [vmem:[#allocation5 + $0x2f0] sm:$0xff]  ;;  %v688_v24 = vld [vmem:[#allocation5 + $0xe0] sm:$0xff] }
 0x1a3   :  { %v1148_v60 = vpack.c.bf16 %v755_v55, %v753_v53  ;;  %v767_v53 = vld [vmem:[#allocation5 + $0x350] sm:$0xff] }
 0x1a5   :  { %1125 = vmatpush1.bf16.msra.mxu0 %v1124_v33 }
 0x1a6   :  { %1127 = vmatprep.subr.bf16.mxu0 %v1126_v43  ;;  %v687_v43 = vld [vmem:[#allocation5 + $0xd8] sm:$0xff] }
 0x1a9   :  { %1129 = vmatpush1.bf16.msra.mxu0 %v1128_v52 }
 0x1aa   :  { %1131 = vmatprep.subr.bf16.mxu0 %v1130_v49  ;;  %v1146_v49 = vpack.c.bf16 %v756_v57, %v754_v56  ;;  %v766_v57 = vld [vmem:[#allocation5 + $0x348] sm:$0xff] }
 0x1ab   :  { %v368_v62 = vpop.f32.mrb[0].mxu1 }
 0x1ac   :  { %v372_v63 = vmax.f32 %v368_v62, 0.0  ;;  %v1095_v3 = vpop.f32.mrb[1].mxu1  ;;  %v672_v62 = vld [vmem:[#allocation5 + $0x60] sm:$0xff] }
 0x1ad   :  { %v742_v3 = vld [vmem:[#allocation5 + $0x288] sm:$0xff]  ;;  %1133 = vmatpush1.bf16.msra.mxu0 %v1132_v10 }
 0x1ae   :  { %1099 = vmatmul.mubr.msk.f32.vlgmr.msra.gmra.mrb[2].mxu1 %vm373_vm7, %v372_v63  ;;  %v674_v63 = vld [vmem:[#allocation5 + $0x70] sm:$0xff]  ;;  %v1134_v17 = vpack.c.bf16 %v744_v7, %v742_v3 }
 0x1af   :  { %1185 = vmatpush1.bf16.msra.mxu1 %v1184_v28  ;;  %v1196_v16 = vpack.c.bf16 %v674_v63, %v672_v62  ;;  %v748_v28 = vld [vmem:[#allocation5 + $0x2b8] sm:$0xff] }
 0x1b0   :  { %1187 = vmatprep.subr.bf16.mxu1 %v1186_v37  ;;  %1135 = vmatprep.subr.bf16.mxu0 %v1134_v17  ;;  %v1138_v33 = vpack.c.bf16 %v748_v28, %v746_v27  ;;  %v1202_v37 = vpack.c.bf16 %v683_v30, %v681_v29  ;;  %v691_v17 = vld [vmem:[#allocation5 + $0xf8] sm:$0xff]  ;;  %v758_v27 = vld [vmem:[#allocation5 + $0x308] sm:$0xff]  ;;  %v757_v30 = vld [vmem:[#allocation5 + $0x300] sm:$0xff] }
 0x1b1   :  { %1137 = vmatpush1.bf16.msra.mxu0 %v1136_v31  ;;  %v760_v28 = vld [vmem:[#allocation5 + $0x318] sm:$0xff]  ;;  %v759_v31 = vld [vmem:[#allocation5 + $0x310] sm:$0xff] }
 0x1b2   :  { %1139 = vmatprep.subr.bf16.mxu0 %v1138_v33  ;;  %v1150_v29 = vpack.c.bf16 %v760_v28, %v758_v27  ;;  %v693_v33 = vld [vmem:[#allocation5 + $0x108] sm:$0xff]  ;;  %v707_v27 = vld [vmem:[#allocation5 + $0x178] sm:$0xff] }
 0x1b3   :  { %1189 = vmatpush1.bf16.msra.mxu1 %v1188_v42  ;;  %v685_v42 = vld [vmem:[#allocation5 + $0xc8] sm:$0xff]  ;;  %v1214_v35 = vpack.c.bf16 %v695_v34, %v693_v33  ;;  %v776_v34 = vld [vmem:[#allocation5 + $0x398] sm:$0xff] }
 0x1b4   :  { %1191 = vmatprep.subr.bf16.mxu1 %v1190_v54  ;;  %v1206_v52 = vpack.c.bf16 %v687_v43, %v685_v42  ;;  %v686_v54 = vld [vmem:[#allocation5 + $0xd0] sm:$0xff]  ;;  %v1154_v42 = vpack.c.bf16 %v764_v41, %v762_v40  ;;  %v761_v43 = vld [vmem:[#allocation5 + $0x320] sm:$0xff]  ;;  %v774_v33 = vld [vmem:[#allocation5 + $0x388] sm:$0xff] }
 0x1b5   :  { %1141 = vmatpush1.bf16.msra.mxu0 %v1140_v44  ;;  %v763_v44 = vld [vmem:[#allocation5 + $0x330] sm:$0xff]  ;;  %v709_v40 = vld [vmem:[#allocation5 + $0x188] sm:$0xff]  ;;  %v711_v41 = vld [vmem:[#allocation5 + $0x198] sm:$0xff] }
 0x1b6   :  { %1143 = vmatprep.subr.bf16.mxu0 %v1142_v46  ;;  %v697_v46 = vld [vmem:[#allocation5 + $0x128] sm:$0xff] }
 0x1b7   :  { %1193 = vmatpush1.bf16.msra.mxu1 %v1192_v59  ;;  %v1208_v59 = vpack.c.bf16 %v686_v54, %v684_v51  ;;  %v1218_v51 = vpack.c.bf16 %v699_v48, %v697_v46  ;;  %v698_v54 = vld [vmem:[#allocation5 + $0x130] sm:$0xff]  ;;  %v778_v46 = vld [vmem:[#allocation5 + $0x3a8] sm:$0xff]  ;;  %v780_v48 = vld [vmem:[#allocation5 + $0x3b8] sm:$0xff] }
 0x1b8   :  { %1195 = vmatprep.subr.bf16.mxu1 %v1194_v61 }
 0x1b9   :  { %1145 = vmatpush1.bf16.msra.mxu0 %v1144_v58  ;;  %v768_v58 = vld [vmem:[#allocation5 + $0x358] sm:$0xff] }
 0x1ba   :  { %1147 = vmatprep.subr.bf16.mxu0 %v1146_v49  ;;  %v765_v49 = vld [vmem:[#allocation5 + $0x340] sm:$0xff] }
 0x1bb   :  { %1197 = vmatpush1.bf16.msra.mxu1 %v1196_v16  ;;  %v689_v16 = vld [vmem:[#allocation5 + $0xe8] sm:$0xff] }
 0x1bc   :  { %1199 = vmatprep.subr.bf16.mxu1 %v1198_v25  ;;  %v1210_v23 = vpack.c.bf16 %v691_v17, %v689_v16  ;;  %v690_v25 = vld [vmem:[#allocation5 + $0xf0] sm:$0xff]  ;;  %v770_v16 = vld [vmem:[#allocation5 + $0x368] sm:$0xff]  ;;  %v772_v17 = vld [vmem:[#allocation5 + $0x378] sm:$0xff] }
 0x1bd   :  { %1149 = vmatpush1.bf16.msra.mxu0 %v1148_v60  ;;  %v1212_v26 = vpack.c.bf16 %v690_v25, %v688_v24  ;;  %v1160_v60 = vpack.c.bf16 %v767_v53, %v765_v49  ;;  %v771_v24 = vld [vmem:[#allocation5 + $0x370] sm:$0xff]  ;;  %v712_v49 = vld [vmem:[#allocation5 + $0x1a0] sm:$0xff] }
 0x1be   :  { %1151 = vmatprep.subr.bf16.mxu0 %v1150_v29  ;;  %v714_v53 = vld [vmem:[#allocation5 + $0x1b0] sm:$0xff] }
 0x1bf   :  { %1201 = vmatpush1.bf16.msra.mxu1 %v1200_v32  ;;  %v1152_v32 = vpack.c.bf16 %v759_v31, %v757_v30  ;;  %v704_v30 = vld [vmem:[#allocation5 + $0x160] sm:$0xff]  ;;  %v706_v31 = vld [vmem:[#allocation5 + $0x170] sm:$0xff] }
 0x1c0   :  { %1203 = vmatprep.subr.bf16.mxu1 %v1202_v37  ;;  %v694_v37 = vld [vmem:[#allocation5 + $0x110] sm:$0xff] }
 0x1c1   :  { %1153 = vmatpush1.bf16.msra.mxu0 %v1152_v32  ;;  %v1216_v38 = vpack.c.bf16 %v694_v37, %v692_v36  ;;  %v1228_v32 = vpack.c.bf16 %v706_v31, %v704_v30  ;;  %v773_v36 = vld [vmem:[#allocation5 + $0x380] sm:$0xff]  ;;  %v775_v37 = vld [vmem:[#allocation5 + $0x390] sm:$0xff]  ;;  %v721_v30 = vld [vmem:[#allocation5 + $0x1e8] sm:$0xff] }
 0x1c2   :  { %1155 = vmatprep.subr.bf16.mxu0 %v1154_v42  ;;  %v1230_v42 = vpack.c.bf16 %v711_v41, %v709_v40 }
 0x1c3   :  { %1205 = vmatpush1.bf16.msra.mxu1 %v1204_v45  ;;  %v1156_v45 = vpack.c.bf16 %v763_v44, %v761_v43  ;;  %v708_v43 = vld [vmem:[#allocation5 + $0x180] sm:$0xff]  ;;  %v710_v44 = vld [vmem:[#allocation5 + $0x190] sm:$0xff] }
 0x1c4   :  { %1207 = vmatprep.subr.bf16.mxu1 %v1206_v52  ;;  %v696_v52 = vld [vmem:[#allocation5 + $0x120] sm:$0xff] }
 0x1c5   :  { %1157 = vmatpush1.bf16.msra.mxu0 %v1156_v45  ;;  %v1220_v56 = vpack.c.bf16 %v698_v54, %v696_v52  ;;  %v1232_v45 = vpack.c.bf16 %v710_v44, %v708_v43  ;;  %v777_v52 = vld [vmem:[#allocation5 + $0x3a0] sm:$0xff]  ;;  %v779_v54 = vld [vmem:[#allocation5 + $0x3b0] sm:$0xff] }
 0x1c7   :  { %1209 = vmatpush1.bf16.msra.mxu1 %v1208_v59  ;;  %v1158_v59 = vpack.c.bf16 %v768_v58, %v766_v57  ;;  %v713_v57 = vld [vmem:[#allocation5 + $0x1a8] sm:$0xff]  ;;  %v715_v58 = vld [vmem:[#allocation5 + $0x1b8] sm:$0xff] }
 0x1c8   :  { %1211 = vmatprep.subr.bf16.mxu1 %v1210_v23  ;;  %v769_v23 = vld [vmem:[#allocation5 + $0x360] sm:$0xff] }
 0x1c9   :  { %1159 = vmatprep.subr.bf16.mxu0 %v1158_v59  ;;  %v1164_v25 = vpack.c.bf16 %v771_v24, %v769_v23  ;;  %v1234_v59 = vpack.c.bf16 %v715_v58, %v713_v57  ;;  %v786_v23 = vld [vmem:[#allocation5 + $0x3e8] sm:$0xff]  ;;  %v788_v24 = vld [vmem:[#allocation5 + $0x3f8] sm:$0xff] }
 0x1ca   :  { %1161 = vmatpush1.bf16.msra.mxu0 %v1160_v60  ;;  %v782_v60 = vld [vmem:[#allocation5 + $0x3c8] sm:$0xff] }
 0x1cb   :  { %1213 = vmatpush1.bf16.msra.mxu1 %v1212_v26  ;;  %v705_v26 = vld [vmem:[#allocation5 + $0x168] sm:$0xff] }
 0x1cc   :  { %1215 = vmatprep.subr.bf16.mxu1 %v1214_v35  ;;  %v1226_v29 = vpack.c.bf16 %v707_v27, %v705_v26  ;;  %v1166_v35 = vpack.c.bf16 %v776_v34, %v774_v33  ;;  %v1178_v26 = vpack.c.bf16 %v788_v24, %v786_v23  ;;  %v785_v27 = vld [vmem:[#allocation5 + $0x3e0] sm:$0xff] }
 0x1cd   :  { %v720_v34 = vld [vmem:[#allocation5 + $0x1e0] sm:$0xff] }
 0x1cf   :  { %1217 = vmatpush1.bf16.msra.mxu1 %v1216_v38  ;;  %v1168_v38 = vpack.c.bf16 %v775_v37, %v773_v36 }
 0x1d0   :  { %1219 = vmatprep.subr.bf16.mxu1 %v1218_v51  ;;  %v1170_v51 = vpack.c.bf16 %v780_v48, %v778_v46 }
 0x1d3   :  { %1221 = vmatpush1.bf16.msra.mxu1 %v1220_v56  ;;  %v1172_v56 = vpack.c.bf16 %v779_v54, %v777_v52 }
 0x273   :  { %v520_v61 = vpop.f32.mrb[2].mxu0 }
 0x274   :  { %v1105_v62 = vpop.f32.mrb[3].mxu0 }
 0x275   :  { %v703_v62 = vld [vmem:[#allocation5 + $0x158] sm:$0xff] }
 0x281   :  { %v447_v63 = vpop.f32.mrb[2].mxu1 }
 0x282   :  { %v521_v3 = vadd.f32 %v520_v61, %v447_v63  ;;  %v1100_v7 = vpop.f32.mrb[3].mxu1  ;;  %v701_v61 = vld [vmem:[#allocation5 + $0x148] sm:$0xff] }
 0x283   :  { %v1222_v7 = vpack.c.bf16 %v703_v62, %v701_v61  ;;  %v784_v61 = vld [vmem:[#allocation5 + $0x3d8] sm:$0xff] }
 0x284   :  { %v524_v10 = vsub.f32 0.0, %v521_v3  ;;  %v1522_v3 = vsub.s32 1, %v1488_v47  ;;  %v1174_v62 = vpack.c.bf16 %v784_v61, %v782_v60 }
 0x285   :  { %1223 = vmatprep.subr.bf16.mxu1 %v1222_v7  ;;  %v783_v7 = vld [vmem:[#allocation5 + $0x3d0] sm:$0xff] }
 0x286   :  { %v525_v11 = vmul.f32 1.442695, %v524_v10  ;;  %v700_v10 = vld [vmem:[#allocation5 + $0x140] sm:$0xff] }
 0x288   :  { %1258 = vpow2.f32 %v525_v11  ;;  %v702_v11 = vld [vmem:[#allocation5 + $0x150] sm:$0xff] }
 0x292   :  { %v1259_v39 = vpop.eup %1258 }
 0x293   :  { %v527_v22 = vadd.f32 1.0, %v1259_v39  ;;  %v1224_v39 = vpack.c.bf16 %v702_v11, %v700_v10  ;;  %v717_v11 = vld [vmem:[#allocation5 + $0x1c8] sm:$0xff] }
 0x295   :  { %1260 = vrcp.f32 %v527_v22  ;;  %v1162_v22 = vpack.c.bf16 %v772_v17, %v770_v16  ;;  %1225 = vmatpush1.bf16.msra.mxu1 %v1224_v39  ;;  %v719_v39 = vld [vmem:[#allocation5 + $0x1d8] sm:$0xff]  ;;  %v716_v16 = vld [vmem:[#allocation5 + $0x1c0] sm:$0xff] }
 0x296   :  { %1227 = vmatprep.subr.bf16.mxu1 %v1226_v29  ;;  %v1238_v17 = vpack.c.bf16 %v719_v39, %v717_v11  ;;  %v787_v29 = vld [vmem:[#allocation5 + $0x3f0] sm:$0xff] }
 0x297   :  { %1163 = vmatprep.subr.bf16.mxu0 %v1162_v22  ;;  %v718_v22 = vld [vmem:[#allocation5 + $0x1d0] sm:$0xff]  ;;  %v1180_v31 = vpack.c.bf16 %v787_v29, %v785_v27 }
 0x298   :  { %1165 = vmatpush1.bf16.msra.mxu0 %v1164_v25  ;;  %v1240_v25 = vpack.c.bf16 %v718_v22, %v716_v16 }
 0x299   :  { %1229 = vmatpush1.bf16.msra.mxu1 %v1228_v32  ;;  %1167 = vmatprep.subr.bf16.mxu0 %v1166_v35  ;;  %v723_v32 = vld [vmem:[#allocation5 + $0x1f8] sm:$0xff]  ;;  %v722_v35 = vld [vmem:[#allocation5 + $0x1f0] sm:$0xff] }
 0x29a   :  { %1231 = vmatprep.subr.bf16.mxu1 %v1230_v42  ;;  %v1242_v33 = vpack.c.bf16 %v723_v32, %v721_v30  ;;  %v1244_v36 = vpack.c.bf16 %v722_v35, %v720_v34 }
 0x29c   :  { %1169 = vmatpush1.bf16.msra.mxu0 %v1168_v38 }
 0x29d   :  { %1233 = vmatpush1.bf16.msra.mxu1 %v1232_v45  ;;  %1171 = vmatprep.subr.bf16.mxu0 %v1170_v51 }
 0x29e   :  { %1235 = vmatprep.subr.bf16.mxu1 %v1234_v59 }
 0x29f   :  { %v1261_v55 = vpop.eup %1260 }
 0x2a0   :  { %v533_v63 = vrot.slane %v1261_v55, %v1518_v50  ;;  %v1525_v28 = vrot.slane %v1261_v55, %v1522_v3  ;;  %1173 = vmatpush1.bf16.msra.mxu0 %v1172_v56  ;;  %v1236_v55 = vpack.c.bf16 %v714_v53, %v712_v49 }
 0x2a1   :  { %1175 = vmatprep.subr.bf16.mxu0 %v1174_v62 }
 0x2a2   :  { %539 = vbcast.lane.b32.xlu1 %v533_v63, 264  ;;  %535 = vbcast.lane.b32.xlu0 %v533_v63, 256 }
 0x2a3   :  { %1237 = vmatpush1.bf16.msra.mxu1 %v1236_v55 }
 0x2a4   :  { %1239 = vmatprep.subr.bf16.mxu1 %v1238_v17 }
 0x2a6   :  { %554 = vbcast.lane.b32.xlu1 %v1525_v28, 256  ;;  %543 = vbcast.lane.b32.xlu0 %v533_v63, 272 }
 0x2a7   :  { %1241 = vmatpush1.bf16.msra.mxu1 %v1240_v25 }
 0x2a8   :  { %1243 = vmatprep.subr.bf16.mxu1 %v1242_v33 }
 0x2aa   :  { %558 = vbcast.lane.b32.xlu1 %v1525_v28, 264  ;;  %547 = vbcast.lane.b32.xlu0 %v533_v63, 280  ;;  %v781_v63 = vld [vmem:[#allocation5 + $0x3c0] sm:$0xff] }
 0x2ab   :  { %v1176_v10 = vpack.c.bf16 %v783_v7, %v781_v63  ;;  %1245 = vmatpush1.bf16.msra.mxu1 %v1244_v36 }
 0x2ad   :  { %1177 = vmatpush1.bf16.msra.mxu0 %v1176_v10 }
 0x2ae   :  { %562 = vbcast.lane.b32.xlu1 %v1525_v28, 272  ;;  %1179 = vmatprep.subr.bf16.mxu0 %v1178_v26 }
 0x2b1   :  { %1181 = vmatpush1.bf16.msra.mxu0 %v1180_v31 }
 0x2b2   :  { %566 = vbcast.lane.b32.xlu1 %v1525_v28, 280 }
 0x314   :  { %v540_v37 = vpop.permute.xlu1 %539  ;;  %v536_v38 = vpop.permute.xlu0 %535 }
 0x315   :  { %v1532_v40 = vmul.f32 %v540_v37, %v1422_v8  ;;  %v1535_v41 = vmul.f32 %v540_v37, %v1424_v9  ;;  %v1538_v28 = vmul.f32 %v536_v38, %v1410_v2  ;;  %v1541_v42 = vmul.f32 %v536_v38, %v1414_v4 }
 0x317   :  { %v584_v8 = vadd.f32 %v1532_v40, %v1538_v28  ;;  %v593_v9 = vadd.f32 %v1535_v41, %v1541_v42  ;;  %v624_v2 = vmax.f32 %v1538_v28, %v1532_v40  ;;  %v633_v4 = vmax.f32 %v1541_v42, %v1535_v41 }
 0x318   :  { %v555_v43 = vpop.permute.xlu1 %554  ;;  %v544_v44 = vpop.permute.xlu0 %543 }
 0x319   :  { %v1544_v45 = vmul.f32 %v544_v44, %v1434_v14  ;;  %v1547_v46 = vmul.f32 %v544_v44, %v1436_v15 }
 0x31b   :  { %v585_v56 = vadd.f32 %v584_v8, %v1544_v45  ;;  %v594_v57 = vadd.f32 %v593_v9, %v1547_v46  ;;  %v625_v58 = vmax.f32 %v624_v2, %v1544_v45  ;;  %v634_v59 = vmax.f32 %v633_v4, %v1547_v46 }
 0x31c   :  { %v559_v48 = vpop.permute.xlu1 %558  ;;  %v548_v51 = vpop.permute.xlu0 %547 }
 0x31d   :  { %v1558_v14 = vmul.f32 %v559_v48, %v1416_v5  ;;  %v1561_v15 = vmul.f32 %v559_v48, %v1418_v6  ;;  %v1564_v52 = vmul.f32 %v548_v51, %v1446_v20  ;;  %v1567_v54 = vmul.f32 %v548_v51, %v1448_v21 }
 0x31e   :  { %v1574_v5 = vmul.f32 %v555_v43, %v1406_v0  ;;  %v1577_v6 = vmul.f32 %v555_v43, %v1408_v1 }
 0x31f   :  { %v586_v20 = vadd.f32 %v585_v56, %v1564_v52  ;;  %v595_v49 = vadd.f32 %v594_v57, %v1567_v54  ;;  %v626_v21 = vmax.f32 %v625_v58, %v1564_v52  ;;  %v635_v53 = vmax.f32 %v634_v59, %v1567_v54 }
 0x320   :  { %v563_v55 = vpop.permute.xlu1 %562  ;;  %v602_v60 = vadd.f32 %v1558_v14, %v1574_v5  ;;  %v611_v61 = vadd.f32 %v1561_v15, %v1577_v6  ;;  %v642_v11 = vmax.f32 %v1574_v5, %v1558_v14  ;;  %v651_v39 = vmax.f32 %v1577_v6, %v1561_v15 }
 0x321   :  { %v1588_v0 = vmul.f32 %v563_v55, %v1430_v12  ;;  %v1591_v1 = vmul.f32 %v563_v55, %v1432_v13  ;;  %v587_v62 = vrot.slane %v586_v20, 4  ;;  %v596_v63 = vrot.slane %v595_v49, 4 }
 0x322   :  { %v627_v7 = vrot.slane %v626_v21, 4  ;;  %v636_v10 = vrot.slane %v635_v53, 4 }
 0x323   :  { %v603_v16 = vadd.f32 %v602_v60, %v1588_v0  ;;  %v612_v17 = vadd.f32 %v611_v61, %v1591_v1  ;;  %v588_v22 = vadd.f32 %v587_v62, %v586_v20  ;;  %v597_v12 = vadd.f32 %v596_v63, %v595_v49 }
 0x324   :  { %v628_v23 = vmax.f32 %v626_v21, %v627_v7  ;;  %v637_v24 = vmax.f32 %v635_v53, %v636_v10  ;;  %v567_v13 = vpop.permute.xlu1 %566  ;;  %v643_v25 = vmax.f32 %v642_v11, %v1588_v0  ;;  %v652_v26 = vmax.f32 %v651_v39, %v1591_v1 }
 0x325   :  { %v1602_v27 = vmul.f32 %v567_v13, %v1442_v18  ;;  %v1605_v29 = vmul.f32 %v567_v13, %v1444_v19  ;;  %v589_v30 = vrot.slane %v588_v22, 2  ;;  %v598_v31 = vrot.slane %v597_v12, 2 }
 0x326   :  { %v629_v32 = vrot.slane %v628_v23, 2  ;;  %v638_v33 = vrot.slane %v637_v24, 2 }
 0x327   :  { %v604_v34 = vadd.f32 %v603_v16, %v1602_v27  ;;  %v613_v35 = vadd.f32 %v612_v17, %v1605_v29  ;;  %v644_v36 = vmax.f32 %v643_v25, %v1602_v27  ;;  %v653_v37 = vmax.f32 %v652_v26, %v1605_v29 }
 0x328   :  { %v590_v38 = vadd.f32 %v589_v30, %v588_v22  ;;  %v599_v43 = vadd.f32 %v598_v31, %v597_v12  ;;  %v630_v19 = vmax.f32 %v628_v23, %v629_v32  ;;  %v639_v2 = vmax.f32 %v637_v24, %v638_v33 }
 0x329   :  { %v605_v44 = vrot.slane %v604_v34, 4  ;;  %v614_v18 = vrot.slane %v613_v35, 4  ;;  %v645_v8 = vrot.slane %v644_v36, 4  ;;  %v654_v9 = vrot.slane %v653_v37, 4 }
 0x32a   :  { %v600_v57 = vrot.slane %v599_v43, 1  ;;  %v591_v58 = vrot.slane %v590_v38, 1  ;;  %v640_v53 = vrot.slane %v639_v2, 1  ;;  %v631_v55 = vrot.slane %v630_v19, 1 }
 0x32b   :  { %v606_v4 = vadd.f32 %v605_v44, %v604_v34  ;;  %v615_v48 = vadd.f32 %v614_v18, %v613_v35  ;;  %v646_v51 = vmax.f32 %v644_v36, %v645_v8  ;;  %v655_v56 = vmax.f32 %v653_v37, %v654_v9 }
 0x32c   :  { %v601_v7 = vadd.f32 %v600_v57, %v599_v43  ;;  %v592_v10 = vadd.f32 %v591_v58, %v590_v38  ;;  %v641_v22 = vmax.f32 %v639_v2, %v640_v53  ;;  %v632_v12 = vmax.f32 %v630_v19, %v631_v55 }
 0x32d   :  { %v607_v59 = vrot.slane %v606_v4, 2  ;;  %v616_v20 = vrot.slane %v615_v48, 2  ;;  %v647_v49 = vrot.slane %v646_v51, 2  ;;  %v656_v21 = vrot.slane %v655_v56, 2 }
 0x32e   :  { %v621_v26 = vmul.f32 0.03125, %v601_v7  ;;  %v620_v30 = vmul.f32 0.03125, %v592_v10  ;;  %v1349_v58 = vmov 1966171168  }
 0x32f   :  { %v608_v60 = vadd.f32 %v607_v59, %v606_v4  ;;  %v648_v61 = vmax.f32 %v646_v51, %v647_v49  ;;  %v657_v62 = vmax.f32 %v655_v56, %v656_v21  ;;  %v617_v63 = vadd.f32 %v616_v20, %v615_v48 }
 0x330   :  { %v963_v59 = vunpack.c.l.s4 %v1349_v58 }
 0x331   :  { %v658_v11 = vrot.slane %v657_v62, 1  ;;  %v649_v39 = vrot.slane %v648_v61, 1  ;;  %v618_v16 = vrot.slane %v617_v63, 1  ;;  %v609_v17 = vrot.slane %v608_v60, 1 }
 0x332   :  { %v964_v20 = vunpack.c.0.s8 %v963_v59 }
 0x333   :  { %v659_v23 = vmax.f32 %v657_v62, %v658_v11  ;;  %v650_v24 = vmax.f32 %v648_v61, %v649_v39  ;;  %v619_v13 = vadd.f32 %v618_v16, %v617_v63  ;;  %v610_v25 = vadd.f32 %v609_v17, %v608_v60 }
 0x334   :  { %v967_v21 = vsub.s32 %v964_v20, %v1488_v47 }
 0x335   :  { %v794_v31 = vsel %vm177_vm4, %v659_v23, %v641_v22  ;;  %v793_v32 = vsel %vm177_vm4, %v650_v24, %v632_v12  ;;  %v623_v33 = vmul.f32 0.03125, %v619_v13  ;;  %v622_v34 = vmul.f32 0.03125, %v610_v25 }
 0x336   :  { %861 = vmatprep.mubr.f32.mxu0 %v794_v31 }
 0x337   :  { %862 = vmatmul.mubr.f32.vlgmr.msra.gmra.mrb[4].mxu0 %v793_v32  ;;  %v873_v35 = vsel %vm177_vm4, %v623_v33, %v621_v26  ;;  %v872_v36 = vsel %vm177_vm4, %v622_v34, %v620_v30 }
 0x338   :  { %940 = vmatprep.mubr.f32.mxu1 %v873_v35 }
 0x339   :  { %941 = vmatmul.mubr.f32.vlgmr.msra.gmra.mrb[4].mxu1 %v872_v36 }
 0x40a   :  { %v863_v37 = vpop.f32.mrb[4].mxu0 }
 0x40b   :  { %v865_v38 = vpop.f32.mrb[5].mxu0 }
 0x40c   :  { %v942_v43 = vpop.f32.mrb[4].mxu1 }
 0x40d   :  { %v943_v44 = vadd.f32 %v942_v43, %v863_v37  ;;  %v944_v18 = vpop.f32.mrb[5].mxu1 }
 0x40e   :  { %v945_v8 = vadd.f32 %v944_v18, %v865_v38 }
 0x40f   :  { %v947_v9 = vsub.f32 0.0, %v943_v44 }
 0x410   :  { %v948_v19 = vsub.f32 0.0, %v945_v8 }
 0x411   :  { %v949_v2 = vmul.f32 1.442695, %v947_v9 }
 0x412   :  { %v951_v4 = vmul.f32 1.442695, %v948_v19 }
 0x413   :  { %1262 = vpow2.f32 %v949_v2 }
 0x414   :  { %1264 = vpow2.f32 %v951_v4 }
 0x41d   :  { %v1263_v48 = vpop.eup %1262 }
 0x41e   :  { %v1265_v51 = vpop.eup %1264  ;;  %v953_v56 = vadd.f32 1.0, %v1263_v48 }
 0x41f   :  { %v954_v57 = vadd.f32 1.0, %v1265_v51 }
 0x420   :  { %1266 = vrcp.f32 %v953_v56 }
 0x421   :  { %1268 = vrcp.f32 %v954_v57 }
 0x42a   :  { %v1267_v49 = vpop.eup %1266 }
 0x42b   :  { %v1269_v53 = vpop.eup %1268 }
 0x42c   :  { %v961_v55 = vcombine.low %v1267_v49, %v1269_v53 }
 0x42e   :  { %v968_v60 = vrot.slane %v961_v55, %v967_v21 }
 0x430   :  { %v969_v61 = vcombine.high %v968_v60, %v968_v60  ;;  %v976_v62 = vrot.slane %v968_v60, %v967_v21 }
 0x432   :  { %v983_v63 = vrot.slane %v969_v61, %v967_v21  ;;  %v987_v7 = vrot.slane %v976_v62, %v1518_v50  ;;  %v991_v10 = vrot.slane %v976_v62, %v1522_v3 }
 0x434   :  { %v995_v11 = vrot.slane %v983_v63, %v1518_v50  ;;  %v999_v39 = vrot.slane %v983_v63, %v1522_v3  ;;  %v1004_v16 = vmul.f32 %v987_v7, %v1538_v28  ;;  %v1005_v17 = vmul.f32 %v991_v10, %v1541_v42 }
 0x435   :  { %v1006_v47 = vmul.f32 %v987_v7, %v1532_v40  ;;  %v1007_v22 = vmul.f32 %v991_v10, %v1535_v41  ;;  %v1008_v12 = vmul.f32 %v987_v7, %v1544_v45  ;;  %v1009_v23 = vmul.f32 %v991_v10, %v1547_v46 }
 0x436   :  { %v1010_v24 = vmul.f32 %v987_v7, %v1564_v52  ;;  %v1011_v50 = vmul.f32 %v991_v10, %v1567_v54  ;;  %v1012_v3 = vmul.f32 %v995_v11, %v1574_v5  ;;  %v1013_v28 = vmul.f32 %v999_v39, %v1577_v6  ;;  %1020 = vst [vmem:[#allocation7] sm:$0xff] %v1004_v16 }
 0x437   :  { %1021 = vst [vmem:[#allocation7 + $0x8] sm:$0xff] %v1005_v17  ;;  %v1014_v40 = vmul.f32 %v995_v11, %v1558_v14  ;;  %v1015_v41 = vmul.f32 %v999_v39, %v1561_v15  ;;  %v1016_v42 = vmul.f32 %v995_v11, %v1588_v0  ;;  %v1017_v45 = vmul.f32 %v999_v39, %v1591_v1 }
 0x438   :  { %1022 = vst [vmem:[#allocation7 + $0x10] sm:$0xff] %v1006_v47  ;;  %1023 = vst [vmem:[#allocation7 + $0x18] sm:$0xff] %v1007_v22  ;;  %v1018_v46 = vmul.f32 %v995_v11, %v1602_v27  ;;  %v1019_v52 = vmul.f32 %v999_v39, %v1605_v29 }
 0x439   :  { %1024 = vst [vmem:[#allocation7 + $0x20] sm:$0xff] %v1008_v12  ;;  %1025 = vst [vmem:[#allocation7 + $0x28] sm:$0xff] %v1009_v23 }
 0x43a   :  { %1026 = vst [vmem:[#allocation7 + $0x30] sm:$0xff] %v1010_v24  ;;  %1027 = vst [vmem:[#allocation7 + $0x38] sm:$0xff] %v1011_v50 }
 0x43b   :  { %1028 = vst [vmem:[#allocation7 + $0x40] sm:$0xff] %v1012_v3  ;;  %1029 = vst [vmem:[#allocation7 + $0x48] sm:$0xff] %v1013_v28 }
 0x43c   :  { %1030 = vst [vmem:[#allocation7 + $0x50] sm:$0xff] %v1014_v40  ;;  %1031 = vst [vmem:[#allocation7 + $0x58] sm:$0xff] %v1015_v41 }
 0x43d   :  { %1032 = vst [vmem:[#allocation7 + $0x60] sm:$0xff] %v1016_v42  ;;  %1033 = vst [vmem:[#allocation7 + $0x68] sm:$0xff] %v1017_v45 }
 0x43e   :  { %1034 = vst [vmem:[#allocation7 + $0x70] sm:$0xff] %v1018_v46  ;;  %1035 = vst [vmem:[#allocation7 + $0x78] sm:$0xff] %v1019_v52 }
 0x43f   :  { %1325 = shalt.err (!%p1322_p6)
}
 0x440   :  { %s1326_s28 = scalar_lea.hbm %s1655_s4, 2048 }
 0x441   :  { %p1327_p7 = scmp.ne.s32.totalorder %s1655_s4, %s1326_s28  ;;  %p1330_p8 = scmp.lt.u32.totalorder %s1326_s28, %s1655_s4 }
 0x443   :  { %p1332_p9 = pnand %p1330_p8, %p1327_p7 }
 0x445   :  { %1335 = shalt.err (!%p1332_p9)
}
 0x446   :  { %1047 = dma.vmem_to_hbm [thread:$0]  %s1042_s22, 2048, %s1655_s4, [#allocation4], %s1343_s25, %s1343_s25, %s1344_s26  }
 0x447   :  { %1340 = dma.done.wait [#allocation4], 2048  }
 0x448   :  { %1341 = vsyncadd [#allocation4], 4294965248 }
 0x449   :  { %1051 = vsyncpa [#allocation3], 1 }
 0x44a   :  { %1052 = vsyncpa [#allocation6], 1 }
 0x44b   :  { %1053 = vsyncpa [#allocation4], 1 }

</bundles_post_ra>
